<compile_context>
chip_gen: v6e
topology: v6e:2x2x1
jax: 0.10.0
libtpu: 0.0.40
codegen_flags: <defaults>
</compile_context>

<pallas_src>
import functools

import numpy as np
import jax
import jax.numpy as jnp
from jax.experimental import pallas as pl
from jax.experimental.pallas import tpu as pltpu

DELTA = 1e-6


# ---------------- Pallas kernel ----------------
def dsf_kernel(x_ref, dsp_ref, u_ref, w_ref, xnew_ref, logdet_ref,
               *, in_dim, hidden_dim, out_dim):
    h = hidden_dim
    LOG100 = np.log(100.0)
    inv = np.log(np.exp(1.0 - DELTA) - 1.0)
    log1md = np.log(1.0 - DELTA)

    # ---- a = softplus(dsp_a + inv), b, w-conditioner: dense (h, TM) slabs ----
    za = dsp_ref[0:h, :] + inv
    a = jnp.maximum(za, 0.0) + jnp.log1p(jnp.exp(-jnp.abs(za)))        # softplus
    b = dsp_ref[h:2 * h, :]
    dsp_w = dsp_ref[2 * h:3 * h, :]

    # ---- pre_sigm[k,m] = a * sum_d softmax_u[d,k,m] * x[d,m] + b  (unrolled over d) ----
    if in_dim == 1:
        # softmax over a singleton axis is identically 1.
        pre_sigm = a * x_ref[0:1, :] + b
    else:
        pu = [u_ref[d * h:(d + 1) * h, :] + dsp_ref[3 * h + d:3 * h + d + 1, :]
              for d in range(in_dim)]                                   # (h, TM) each
        mu = pu[0]
        for d in range(1, in_dim):
            mu = jnp.maximum(mu, pu[d])
        eu = [jnp.exp(p - mu) for p in pu]
        su = eu[0]
        ux = eu[0] * x_ref[0:1, :]
        for d in range(1, in_dim):
            su = su + eu[d]
            ux = ux + eu[d] * x_ref[d:d + 1, :]
        pre_sigm = a * (ux * pl.reciprocal(su, approx=False)) + b

    # ---- sigmoid and a*sigm*(1-sigm) from ONE exp, zero logs ----
    e = jnp.exp(-jnp.abs(pre_sigm))
    r = pl.reciprocal(1.0 + e, approx=False)
    sigm = jnp.where(pre_sigm >= 0.0, r, e * r)
    adsig = a * (e * r * r)                                             # a * sigm * (1-sigm)

    # ---- per-output-dim tail (out_dim tiny; unrolled keeps everything (h, TM)) ----
    for o in range(out_dim):
        pw = w_ref[o * h:(o + 1) * h, :] + dsp_w                        # (h, TM)
        mw = jnp.max(pw, axis=0, keepdims=True)
        ew = jnp.exp(pw - mw)
        inv_sw = pl.reciprocal(jnp.sum(ew, axis=0, keepdims=True), approx=False)

        x_pre = jnp.sum(ew * sigm, axis=0, keepdims=True) * inv_sw     # (1, TM)
        xpc = x_pre * (1.0 - DELTA) + DELTA * 0.5
        log_xpc = jnp.log(xpc * 100.0) - LOG100
        log_1mxpc = jnp.log((1.0 - xpc) * 100.0) - LOG100
        xnew_ref[o:o + 1, :] = log_xpc - log_1mxpc

        # logsumexp over hidden collapsed: exp(logj_k) = w_sm*a*sigm*(1-sigm)*exp(-2*delta)
        s = jnp.sum(ew * adsig, axis=0, keepdims=True) * inv_sw
        s = jnp.maximum(s, 1e-37)   # underflow guard for extreme |pre_sigm| saturation
        logdet_ref[o:o + 1, :] = (jnp.log(s * 100.0) - LOG100 - 2.0 * DELTA
                                  + log1md - (log_xpc + log_1mxpc))


# ---------------- wrapper ----------------
def dense_sigmoid_flow_forward(x, dsparams, u_param, w_param,
                               *, in_dim, hidden_dim, out_dim, tm=2048):
    # TODO(synk): only the logdet=None (fresh/zero initial logdet) path of the torch
    # forward is implemented; chained non-None logdet inputs are not supported (the
    # in_dim-logsumexp collapse inside the kernel relies on this path).
    if x.ndim == 2:
        x = x[..., None]
    B, N = x.shape[0], x.shape[1]
    M = B * N
    h = hidden_dim
    P = 3 * h + in_dim

    # Lane-dense layout: rows M on the last (lane) axis, tiny feature axes on sublanes.
    x_t = x.reshape(M, in_dim).astype(jnp.float32).T                   # (in, M)
    d_t = dsparams.reshape(M, P).astype(jnp.float32).T                 # (P, M)
    # Stacked parameter columns -> kernel slices (h, 1) blocks that broadcast along
    # lanes with no in-kernel relayout.
    u_flat = u_param.astype(jnp.float32).T.reshape(in_dim * h, 1)      # rows d*h:(d+1)*h = u[:, d]
    w_flat = w_param.astype(jnp.float32).reshape(out_dim * h, 1)       # rows o*h:(o+1)*h = w[o, :]

    # Lane tile: multiple of 128; keep >= 4 grid steps when M allows (v7x megacore);
    # ragged tail is padded (no divisibility assert).
    tm_req = max(128, (int(tm) // 128) * 128)
    tm_mega = max(128, pl.cdiv(pl.cdiv(M, 4), 128) * 128)
    tm_eff = min(tm_req, tm_mega)
    M_pad = pl.cdiv(M, tm_eff) * tm_eff
    if M_pad != M:
        x_t = jnp.pad(x_t, ((0, 0), (0, M_pad - M)))
        d_t = jnp.pad(d_t, ((0, 0), (0, M_pad - M)))

    kernel = functools.partial(dsf_kernel, in_dim=in_dim,
                               hidden_dim=hidden_dim, out_dim=out_dim)
    xnew_t, logdet_t = pl.pallas_call(
        kernel,
        out_shape=(jax.ShapeDtypeStruct((out_dim, M_pad), jnp.float32),
                   jax.ShapeDtypeStruct((out_dim, M_pad), jnp.float32)),
        grid_spec=pltpu.PrefetchScalarGridSpec(
            num_scalar_prefetch=0,
            grid=(M_pad // tm_eff,),
            in_specs=[
                pl.BlockSpec((in_dim, tm_eff), lambda i: (0, i)),
                pl.BlockSpec((P, tm_eff), lambda i: (0, i)),
                pl.BlockSpec((in_dim * h, 1), lambda i: (0, 0)),
                pl.BlockSpec((out_dim * h, 1), lambda i: (0, 0)),
            ],
            out_specs=[
                pl.BlockSpec((out_dim, tm_eff), lambda i: (0, i)),
                pl.BlockSpec((out_dim, tm_eff), lambda i: (0, i)),
            ],
        ),
        compiler_params=pltpu.CompilerParams(
            dimension_semantics=("parallel",),
            vmem_limit_bytes=32 * 1024 * 1024,   # ~2 MiB actually used at tm=2048; safe on v7x
        ),
    )(x_t, d_t, u_flat, w_flat)

    xnew = xnew_t[:, :M].T.reshape(B, N, out_dim)
    logdet = logdet_t[:, :M].T.reshape(B, N, out_dim, 1)
    if out_dim == 1:                                    # mirror torch .squeeze(-1)
        xnew = xnew[..., 0]
    return xnew, logdet


# ---------------- plain-JAX reference (exact torch-module semantics, for validation) ----------------
def _softplus(x):
    return jnp.maximum(x, 0.0) + jnp.log1p(jnp.exp(-jnp.abs(x)))


def _logf(x):
    return jnp.log(x * 100.0) - np.log(100.0)


def _logsigmoid(x):
    return -(_softplus(-x) + DELTA)


def _softmax(x):
    m = jnp.max(x, axis=-1, keepdims=True)
    e = jnp.exp(x - m)
    return e / jnp.sum(e, axis=-1, keepdims=True)


def _log_softmax(x):
    m = jnp.max(x, axis=-1, keepdims=True)
    s = x - m
    return s - jnp.log(jnp.sum(jnp.exp(s), axis=-1, keepdims=True))


def ref_forward(x, dsparams, u_param, w_param, hidden_dim, in_dim, out_dim):
    if x.ndim == 2:
        x = x[..., None]
    ndim = hidden_dim
    inv = np.log(np.exp(1.0 - DELTA) - 1.0)
    pre_u = u_param[None, None] + dsparams[:, :, -in_dim:][:, :, None, :]
    pre_w = w_param[None, None] + dsparams[:, :, 2 * ndim:3 * ndim][:, :, None, :]
    a = _softplus(dsparams[:, :, 0:ndim] + inv)
    b = dsparams[:, :, ndim:2 * ndim]
    w = _softmax(pre_w)
    u = _softmax(pre_u)
    pre_sigm = jnp.sum(u * a[:, :, :, None] * x[:, :, None, :], axis=3) + b
    sigm = jax.nn.sigmoid(pre_sigm)
    x_pre = jnp.sum(w * sigm[:, :, None, :], axis=3)
    xpc = x_pre * (1.0 - DELTA) + DELTA * 0.5
    xnew = _logf(xpc) - _logf(1.0 - xpc)
    logj = (_log_softmax(pre_w)
            + _logsigmoid(pre_sigm)[:, :, None, :]
            + _logsigmoid(-pre_sigm)[:, :, None, :]
            + _logf(a)[:, :, None, :])
    logj = logj[:, :, :, :, None] + _log_softmax(pre_u)[:, :, None, :, :]
    logj = jax.scipy.special.logsumexp(logj, axis=3)                       # (B,N,out,in)
    logdet_ = logj + np.log(1.0 - DELTA) - (_logf(xpc) + _logf(1.0 - xpc))[:, :, :, None]
    logdet = jax.scipy.special.logsumexp(logdet_, axis=3)[..., None]       # (B,N,out,1)
    if out_dim == 1:
        xnew = xnew[..., 0]
    return xnew, logdet


if __name__ == "__main__":
    B, N = 2, 8
    in_dim, hidden_dim, out_dim = 2, 8, 2

    key = jax.random.PRNGKey(0)
    k1, k2, k3, k4 = jax.random.split(key, 4)
    x = jax.random.normal(k1, (B, N, in_dim), dtype=jnp.float32)
    dsparams = 0.5 * jax.random.normal(k2, (B, N, 3 * hidden_dim + in_dim),
                                       dtype=jnp.float32)
    # deterministic parameter init mirroring reset_parameters(): U(-0.001, 0.001)
    u_param = jax.random.uniform(k3, (hidden_dim, in_dim), dtype=jnp.float32,
                                 minval=-0.001, maxval=0.001)
    w_param = jax.random.uniform(k4, (out_dim, hidden_dim), dtype=jnp.float32,
                                 minval=-0.001, maxval=0.001)

    xnew, logdet = dense_sigmoid_flow_forward(
        x, dsparams, u_param, w_param,
        in_dim=in_dim, hidden_dim=hidden_dim, out_dim=out_dim)
    jax.block_until_ready((xnew, logdet))

    xr, ldr = ref_forward(x, dsparams, u_param, w_param, hidden_dim, in_dim, out_dim)
    assert xnew.shape == xr.shape and logdet.shape == ldr.shape
    assert jnp.allclose(xnew, xr, atol=1e-4, rtol=1e-4)
    assert jnp.allclose(logdet, ldr, atol=1e-4, rtol=1e-4)
    print("KERNEL_OK")
</pallas_src>

<mosaic_0001>
module attributes {stable_mosaic.version = 11 : i64} {
  func.func @dsf_kernel(%arg0: i32, %arg1: memref<2x128xf32, #tpu.memory_space<vmem>>, %arg2: memref<26x128xf32, #tpu.memory_space<vmem>>, %arg3: memref<16x1xf32, #tpu.memory_space<vmem>>, %arg4: memref<16x1xf32, #tpu.memory_space<vmem>>, %arg5: memref<2x128xf32, #tpu.memory_space<vmem>>, %arg6: memref<2x128xf32, #tpu.memory_space<vmem>>) attributes {dimension_semantics = [#tpu.dimension_semantics<parallel>], iteration_bounds = array<i64: 1>, scalar_prefetch = 0 : i64, scratch_operands = 0 : i64, tpu.core_type = #tpu.core_type<tc>, window_params = [{transform_indices = @transform_0, window_bounds = array<i64: 2, 128>}, {transform_indices = @transform_1, window_bounds = array<i64: 26, 128>}, {pipeline_mode = #tpu.pipeline_mode<synchronous>, transform_indices = @transform_2, window_bounds = array<i64: 16, 1>}, {pipeline_mode = #tpu.pipeline_mode<synchronous>, transform_indices = @transform_3, window_bounds = array<i64: 16, 1>}, {transform_indices = @transform_4, window_bounds = array<i64: 2, 128>}, {transform_indices = @transform_5, window_bounds = array<i64: 2, 128>}]} {
    %c0 = arith.constant 0 : index
    %c0_0 = arith.constant 0 : index
    %0 = vector.load %arg2[%c0, %c0_0] : memref<26x128xf32, #tpu.memory_space<vmem>>, vector<8x128xf32>
    %cst = arith.constant 0.541323245 : f32
    %1 = vector.broadcast %cst : f32 to vector<8x128xf32>
    %2 = arith.addf %0, %1 : vector<8x128xf32>
    %cst_1 = arith.constant 0.000000e+00 : f32
    %3 = vector.broadcast %cst_1 : f32 to vector<8x128xf32>
    %4 = arith.maximumf %2, %3 : vector<8x128xf32>
    %5 = math.absf %2 : vector<8x128xf32>
    %cst_2 = arith.constant 0.000000e+00 : f32
    %6 = vector.broadcast %cst_2 : f32 to vector<8x128xf32>
    %7 = arith.subf %6, %5 : vector<8x128xf32>
    %8 = math.exp %7 : vector<8x128xf32>
    %9 = math.log1p %8 : vector<8x128xf32>
    %10 = arith.addf %4, %9 : vector<8x128xf32>
    %c8 = arith.constant 8 : index
    %c0_3 = arith.constant 0 : index
    %11 = vector.load %arg2[%c8, %c0_3] : memref<26x128xf32, #tpu.memory_space<vmem>>, vector<8x128xf32>
    %c16 = arith.constant 16 : index
    %c0_4 = arith.constant 0 : index
    %12 = vector.load %arg2[%c16, %c0_4] : memref<26x128xf32, #tpu.memory_space<vmem>>, vector<8x128xf32>
    %c0_5 = arith.constant 0 : index
    %c0_6 = arith.constant 0 : index
    %13 = vector.load %arg3[%c0_5, %c0_6] : memref<16x1xf32, #tpu.memory_space<vmem>>, vector<8x1xf32>
    %c24 = arith.constant 24 : index
    %c0_7 = arith.constant 0 : index
    %14 = vector.load %arg2[%c24, %c0_7] : memref<26x128xf32, #tpu.memory_space<vmem>>, vector<1x128xf32>
    %15 = vector.broadcast %13 : vector<8x1xf32> to vector<8x128xf32>
    %16 = vector.broadcast %14 : vector<1x128xf32> to vector<8x128xf32>
    %17 = arith.addf %15, %16 : vector<8x128xf32>
    %c8_8 = arith.constant 8 : index
    %c0_9 = arith.constant 0 : index
    %18 = vector.load %arg3[%c8_8, %c0_9] : memref<16x1xf32, #tpu.memory_space<vmem>>, vector<8x1xf32>
    %c25 = arith.constant 25 : index
    %c0_10 = arith.constant 0 : index
    %19 = vector.load %arg2[%c25, %c0_10] : memref<26x128xf32, #tpu.memory_space<vmem>>, vector<1x128xf32>
    %20 = vector.broadcast %18 : vector<8x1xf32> to vector<8x128xf32>
    %21 = vector.broadcast %19 : vector<1x128xf32> to vector<8x128xf32>
    %22 = arith.addf %20, %21 : vector<8x128xf32>
    %23 = arith.maximumf %17, %22 : vector<8x128xf32>
    %24 = arith.subf %17, %23 : vector<8x128xf32>
    %25 = math.exp %24 : vector<8x128xf32>
    %26 = arith.subf %22, %23 : vector<8x128xf32>
    %27 = math.exp %26 : vector<8x128xf32>
    %c0_11 = arith.constant 0 : index
    %c0_12 = arith.constant 0 : index
    %28 = vector.load %arg1[%c0_11, %c0_12] : memref<2x128xf32, #tpu.memory_space<vmem>>, vector<1x128xf32>
    %29 = vector.broadcast %28 : vector<1x128xf32> to vector<8x128xf32>
    %30 = arith.mulf %25, %29 : vector<8x128xf32>
    %31 = arith.addf %25, %27 : vector<8x128xf32>
    %c1 = arith.constant 1 : index
    %c0_13 = arith.constant 0 : index
    %32 = vector.load %arg1[%c1, %c0_13] : memref<2x128xf32, #tpu.memory_space<vmem>>, vector<1x128xf32>
    %33 = vector.broadcast %32 : vector<1x128xf32> to vector<8x128xf32>
    %34 = arith.mulf %27, %33 : vector<8x128xf32>
    %35 = arith.addf %30, %34 : vector<8x128xf32>
    %36 = tpu.reciprocal %31 : vector<8x128xf32> -> vector<8x128xf32>
    %37 = arith.mulf %35, %36 : vector<8x128xf32>
    %38 = arith.mulf %10, %37 : vector<8x128xf32>
    %39 = arith.addf %38, %11 : vector<8x128xf32>
    %40 = math.absf %39 : vector<8x128xf32>
    %cst_14 = arith.constant 0.000000e+00 : f32
    %41 = vector.broadcast %cst_14 : f32 to vector<8x128xf32>
    %42 = arith.subf %41, %40 : vector<8x128xf32>
    %43 = math.exp %42 : vector<8x128xf32>
    %cst_15 = arith.constant 1.000000e+00 : f32
    %44 = vector.broadcast %cst_15 : f32 to vector<8x128xf32>
    %45 = arith.addf %44, %43 : vector<8x128xf32>
    %46 = tpu.reciprocal %45 : vector<8x128xf32> -> vector<8x128xf32>
    %cst_16 = arith.constant 0.000000e+00 : f32
    %47 = vector.broadcast %cst_16 : f32 to vector<8x128xf32>
    %48 = arith.cmpf oge, %39, %47 : vector<8x128xf32>
    %49 = arith.mulf %43, %46 : vector<8x128xf32>
    %50 = arith.select %48, %46, %49 : vector<8x128xi1>, vector<8x128xf32>
    %51 = arith.mulf %43, %46 : vector<8x128xf32>
    %52 = arith.mulf %51, %46 : vector<8x128xf32>
    %53 = arith.mulf %10, %52 : vector<8x128xf32>
    %c0_17 = arith.constant 0 : index
    %c0_18 = arith.constant 0 : index
    %54 = vector.load %arg4[%c0_17, %c0_18] : memref<16x1xf32, #tpu.memory_space<vmem>>, vector<8x1xf32>
    %55 = vector.broadcast %54 : vector<8x1xf32> to vector<8x128xf32>
    %56 = arith.addf %55, %12 : vector<8x128xf32>
    %cst_19 = arith.constant dense<0xFF800000> : vector<128xf32>
    %57 = vector.multi_reduction <maximumf>, %56, %cst_19 [0] : vector<8x128xf32> to vector<128xf32>
    %58 = vector.shape_cast %57 : vector<128xf32> to vector<1x128xf32>
    %59 = vector.broadcast %58 : vector<1x128xf32> to vector<8x128xf32>
    %60 = arith.subf %56, %59 : vector<8x128xf32>
    %61 = math.exp %60 : vector<8x128xf32>
    %cst_20 = arith.constant dense<0.000000e+00> : vector<128xf32>
    %62 = vector.multi_reduction <add>, %61, %cst_20 [0] : vector<8x128xf32> to vector<128xf32>
    %63 = vector.shape_cast %62 : vector<128xf32> to vector<1x128xf32>
    %64 = tpu.reciprocal %63 : vector<1x128xf32> -> vector<1x128xf32>
    %65 = arith.mulf %61, %50 : vector<8x128xf32>
    %cst_21 = arith.constant dense<0.000000e+00> : vector<128xf32>
    %66 = vector.multi_reduction <add>, %65, %cst_21 [0] : vector<8x128xf32> to vector<128xf32>
    %67 = vector.shape_cast %66 : vector<128xf32> to vector<1x128xf32>
    %68 = arith.mulf %67, %64 : vector<1x128xf32>
    %cst_22 = arith.constant 0.999998986 : f32
    %69 = vector.broadcast %cst_22 : f32 to vector<1x128xf32>
    %70 = arith.mulf %68, %69 : vector<1x128xf32>
    %cst_23 = arith.constant 5.000000e-07 : f32
    %71 = vector.broadcast %cst_23 : f32 to vector<1x128xf32>
    %72 = arith.addf %70, %71 : vector<1x128xf32>
    %cst_24 = arith.constant 1.000000e+02 : f32
    %73 = vector.broadcast %cst_24 : f32 to vector<1x128xf32>
    %74 = arith.mulf %72, %73 : vector<1x128xf32>
    %75 = math.log %74 : vector<1x128xf32>
    %cst_25 = arith.constant 4.60517025 : f32
    %76 = vector.broadcast %cst_25 : f32 to vector<1x128xf32>
    %77 = arith.subf %75, %76 : vector<1x128xf32>
    %cst_26 = arith.constant 1.000000e+00 : f32
    %78 = vector.broadcast %cst_26 : f32 to vector<1x128xf32>
    %79 = arith.subf %78, %72 : vector<1x128xf32>
    %cst_27 = arith.constant 1.000000e+02 : f32
    %80 = vector.broadcast %cst_27 : f32 to vector<1x128xf32>
    %81 = arith.mulf %79, %80 : vector<1x128xf32>
    %82 = math.log %81 : vector<1x128xf32>
    %cst_28 = arith.constant 4.60517025 : f32
    %83 = vector.broadcast %cst_28 : f32 to vector<1x128xf32>
    %84 = arith.subf %82, %83 : vector<1x128xf32>
    %85 = arith.subf %77, %84 : vector<1x128xf32>
    %c0_29 = arith.constant 0 : index
    %c0_30 = arith.constant 0 : index
    %86 = vector.load %arg5[%c0_29, %c0_30] : memref<2x128xf32, #tpu.memory_space<vmem>>, vector<1x128xf32>
    tpu.vector_store %arg5[%c0_29, %c0_30], %85 {strides = array<i32>} : memref<2x128xf32, #tpu.memory_space<vmem>>, vector<1x128xf32>,
    %87 = arith.mulf %61, %53 : vector<8x128xf32>
    %cst_31 = arith.constant dense<0.000000e+00> : vector<128xf32>
    %88 = vector.multi_reduction <add>, %87, %cst_31 [0] : vector<8x128xf32> to vector<128xf32>
    %89 = vector.shape_cast %88 : vector<128xf32> to vector<1x128xf32>
    %90 = arith.mulf %89, %64 : vector<1x128xf32>
    %cst_32 = arith.constant 9.99999991E-38 : f32
    %91 = vector.broadcast %cst_32 : f32 to vector<1x128xf32>
    %92 = arith.maximumf %90, %91 : vector<1x128xf32>
    %cst_33 = arith.constant 1.000000e+02 : f32
    %93 = vector.broadcast %cst_33 : f32 to vector<1x128xf32>
    %94 = arith.mulf %92, %93 : vector<1x128xf32>
    %95 = math.log %94 : vector<1x128xf32>
    %cst_34 = arith.constant 4.60517025 : f32
    %96 = vector.broadcast %cst_34 : f32 to vector<1x128xf32>
    %97 = arith.subf %95, %96 : vector<1x128xf32>
    %cst_35 = arith.constant 2.000000e-06 : f32
    %98 = vector.broadcast %cst_35 : f32 to vector<1x128xf32>
    %99 = arith.subf %97, %98 : vector<1x128xf32>
    %cst_36 = arith.constant -1.00000045E-6 : f32
    %100 = vector.broadcast %cst_36 : f32 to vector<1x128xf32>
    %101 = arith.addf %99, %100 : vector<1x128xf32>
    %102 = arith.addf %77, %84 : vector<1x128xf32>
    %103 = arith.subf %101, %102 : vector<1x128xf32>
    %c0_37 = arith.constant 0 : index
    %c0_38 = arith.constant 0 : index
    %104 = vector.load %arg6[%c0_37, %c0_38] : memref<2x128xf32, #tpu.memory_space<vmem>>, vector<1x128xf32>
    tpu.vector_store %arg6[%c0_37, %c0_38], %103 {strides = array<i32>} : memref<2x128xf32, #tpu.memory_space<vmem>>, vector<1x128xf32>,
    %c8_39 = arith.constant 8 : index
    %c0_40 = arith.constant 0 : index
    %105 = vector.load %arg4[%c8_39, %c0_40] : memref<16x1xf32, #tpu.memory_space<vmem>>, vector<8x1xf32>
    %106 = vector.broadcast %105 : vector<8x1xf32> to vector<8x128xf32>
    %107 = arith.addf %106, %12 : vector<8x128xf32>
    %cst_41 = arith.constant dense<0xFF800000> : vector<128xf32>
    %108 = vector.multi_reduction <maximumf>, %107, %cst_41 [0] : vector<8x128xf32> to vector<128xf32>
    %109 = vector.shape_cast %108 : vector<128xf32> to vector<1x128xf32>
    %110 = vector.broadcast %109 : vector<1x128xf32> to vector<8x128xf32>
    %111 = arith.subf %107, %110 : vector<8x128xf32>
    %112 = math.exp %111 : vector<8x128xf32>
    %cst_42 = arith.constant dense<0.000000e+00> : vector<128xf32>
    %113 = vector.multi_reduction <add>, %112, %cst_42 [0] : vector<8x128xf32> to vector<128xf32>
    %114 = vector.shape_cast %113 : vector<128xf32> to vector<1x128xf32>
    %115 = tpu.reciprocal %114 : vector<1x128xf32> -> vector<1x128xf32>
    %116 = arith.mulf %112, %50 : vector<8x128xf32>
    %cst_43 = arith.constant dense<0.000000e+00> : vector<128xf32>
    %117 = vector.multi_reduction <add>, %116, %cst_43 [0] : vector<8x128xf32> to vector<128xf32>
    %118 = vector.shape_cast %117 : vector<128xf32> to vector<1x128xf32>
    %119 = arith.mulf %118, %115 : vector<1x128xf32>
    %cst_44 = arith.constant 0.999998986 : f32
    %120 = vector.broadcast %cst_44 : f32 to vector<1x128xf32>
    %121 = arith.mulf %119, %120 : vector<1x128xf32>
    %cst_45 = arith.constant 5.000000e-07 : f32
    %122 = vector.broadcast %cst_45 : f32 to vector<1x128xf32>
    %123 = arith.addf %121, %122 : vector<1x128xf32>
    %cst_46 = arith.constant 1.000000e+02 : f32
    %124 = vector.broadcast %cst_46 : f32 to vector<1x128xf32>
    %125 = arith.mulf %123, %124 : vector<1x128xf32>
    %126 = math.log %125 : vector<1x128xf32>
    %cst_47 = arith.constant 4.60517025 : f32
    %127 = vector.broadcast %cst_47 : f32 to vector<1x128xf32>
    %128 = arith.subf %126, %127 : vector<1x128xf32>
    %cst_48 = arith.constant 1.000000e+00 : f32
    %129 = vector.broadcast %cst_48 : f32 to vector<1x128xf32>
    %130 = arith.subf %129, %123 : vector<1x128xf32>
    %cst_49 = arith.constant 1.000000e+02 : f32
    %131 = vector.broadcast %cst_49 : f32 to vector<1x128xf32>
    %132 = arith.mulf %130, %131 : vector<1x128xf32>
    %133 = math.log %132 : vector<1x128xf32>
    %cst_50 = arith.constant 4.60517025 : f32
    %134 = vector.broadcast %cst_50 : f32 to vector<1x128xf32>
    %135 = arith.subf %133, %134 : vector<1x128xf32>
    %136 = arith.subf %128, %135 : vector<1x128xf32>
    %c1_51 = arith.constant 1 : index
    %c0_52 = arith.constant 0 : index
    %137 = vector.load %arg5[%c1_51, %c0_52] : memref<2x128xf32, #tpu.memory_space<vmem>>, vector<1x128xf32>
    tpu.vector_store %arg5[%c1_51, %c0_52], %136 {strides = array<i32>} : memref<2x128xf32, #tpu.memory_space<vmem>>, vector<1x128xf32>,
    %138 = arith.mulf %112, %53 : vector<8x128xf32>
    %cst_53 = arith.constant dense<0.000000e+00> : vector<128xf32>
    %139 = vector.multi_reduction <add>, %138, %cst_53 [0] : vector<8x128xf32> to vector<128xf32>
    %140 = vector.shape_cast %139 : vector<128xf32> to vector<1x128xf32>
    %141 = arith.mulf %140, %115 : vector<1x128xf32>
    %cst_54 = arith.constant 9.99999991E-38 : f32
    %142 = vector.broadcast %cst_54 : f32 to vector<1x128xf32>
    %143 = arith.maximumf %141, %142 : vector<1x128xf32>
    %cst_55 = arith.constant 1.000000e+02 : f32
    %144 = vector.broadcast %cst_55 : f32 to vector<1x128xf32>
    %145 = arith.mulf %143, %144 : vector<1x128xf32>
    %146 = math.log %145 : vector<1x128xf32>
    %cst_56 = arith.constant 4.60517025 : f32
    %147 = vector.broadcast %cst_56 : f32 to vector<1x128xf32>
    %148 = arith.subf %146, %147 : vector<1x128xf32>
    %cst_57 = arith.constant 2.000000e-06 : f32
    %149 = vector.broadcast %cst_57 : f32 to vector<1x128xf32>
    %150 = arith.subf %148, %149 : vector<1x128xf32>
    %cst_58 = arith.constant -1.00000045E-6 : f32
    %151 = vector.broadcast %cst_58 : f32 to vector<1x128xf32>
    %152 = arith.addf %150, %151 : vector<1x128xf32>
    %153 = arith.addf %128, %135 : vector<1x128xf32>
    %154 = arith.subf %152, %153 : vector<1x128xf32>
    %c1_59 = arith.constant 1 : index
    %c0_60 = arith.constant 0 : index
    %155 = vector.load %arg6[%c1_59, %c0_60] : memref<2x128xf32, #tpu.memory_space<vmem>>, vector<1x128xf32>
    tpu.vector_store %arg6[%c1_59, %c0_60], %154 {strides = array<i32>} : memref<2x128xf32, #tpu.memory_space<vmem>>, vector<1x128xf32>,
    return
  }
  func.func @transform_0(%arg0: i32) -> (i32, i32) {
    %c0_i32 = arith.constant 0 : i32
    %c0_i32_0 = arith.constant 0 : i32
    return %c0_i32, %arg0 : i32, i32
  }
  func.func @transform_1(%arg0: i32) -> (i32, i32) {
    %c0_i32 = arith.constant 0 : i32
    %c0_i32_0 = arith.constant 0 : i32
    return %c0_i32, %arg0 : i32, i32
  }
  func.func @transform_2(%arg0: i32) -> (i32, i32) {
    %c0_i32 = arith.constant 0 : i32
    %c0_i32_0 = arith.constant 0 : i32
    %c0_i32_1 = arith.constant 0 : i32
    return %c0_i32, %c0_i32_0 : i32, i32
  }
  func.func @transform_3(%arg0: i32) -> (i32, i32) {
    %c0_i32 = arith.constant 0 : i32
    %c0_i32_0 = arith.constant 0 : i32
    %c0_i32_1 = arith.constant 0 : i32
    return %c0_i32, %c0_i32_0 : i32, i32
  }
  func.func @transform_4(%arg0: i32) -> (i32, i32) {
    %c0_i32 = arith.constant 0 : i32
    %c0_i32_0 = arith.constant 0 : i32
    return %c0_i32, %arg0 : i32, i32
  }
  func.func @transform_5(%arg0: i32) -> (i32, i32) {
    %c0_i32 = arith.constant 0 : i32
    %c0_i32_0 = arith.constant 0 : i32
    return %c0_i32, %arg0 : i32, i32
  }
}

</mosaic_0001>

<bundles_post_ra>
// kernel: tpu_custom_call.1
= control target key start
LH: loop header
LB: loop body
LE: loop exit
PB: predicated region body
PF: predicated region fallthrough
CT: control target
= control target key end

     0   :  { %11 = vsyncpa [#allocation3], 0  ;;  %v347_v2 = vmov 0   ;;  %s419_s0 = inlined_call_operand.vmem [shape: f32[2,128], index: 0, kind: input, shape index: {}]   ;;  %s420_s1 = inlined_call_operand.vmem [shape: f32[26,128], index: 1, kind: input, shape index: {}]   ;;  %s421_s2 = inlined_call_operand.vmem [shape: f32[16,1], index: 2, kind: input, shape index: {}]   ;;  %s422_s3 = inlined_call_operand.vmem [shape: f32[16,1], index: 3, kind: input, shape index: {}]   ;;  %s423_s4 = inlined_call_operand.hbm [shape: f32[2,128], index: 4, kind: output, shape index: {0}]   ;;  %s424_s5 = inlined_call_operand.hbm [shape: f32[2,128], index: 5, kind: output, shape index: {1}]  }
   0x1   :  { %v40_v0 = vld [vmem:[%s421_s2] sm:$0xff]  ;;  %267 = vset.pattern.permute.xlu0 %v347_v2  ;;  %268 = vset.pattern.permute.xlu1 %v347_v2  ;;  %v52_v3 = vld [vmem:[%s421_s2 + $0x8] sm:$0xff] }
   0x2   :  { %v100_v1 = vld [vmem:[%s422_s3] sm:$0xff]  ;;  %44 = vperm.xlu0 %267, %v40_v0   ;;  %v162_v4 = vld [vmem:[%s422_s3 + $0x8] sm:$0xff] }
   0x3   :  { %103 = vperm.xlu1 %268, %v100_v1  }
   0x4   :  { %12 = vsyncpa [#allocation5], 0  ;;  %v21_v5 = vld [vmem:[%s420_s1] sm:$0xff]  ;;  %v252_v11 = vld [vmem:[%s420_s1 + $0x18] ss:$0 sm:$0xff]  ;;  %s349_s13 = smov [#allocation4]  }
   0x5   :  { %v22_v6 = vadd.f32 0.54132324, %v21_v5  ;;  %v253_v12 = vld [vmem:[%s420_s1 + $0x19] ss:$0 sm:$0xff]  ;;  %v39_v20 = vld [vmem:[%s420_s1 + $0x10] sm:$0xff]  ;;  %v38_v63 = vld [vmem:[%s420_s1 + $0x8] sm:$0xff] }
   0x6   :  { %56 = vperm.xlu0 %267, %v52_v3   ;;  %v254_v45 = vld [vmem:[%s419_s0] ss:$0 sm:$0xff]  ;;  %v255_v46 = vld [vmem:[%s419_s0 + $0x1] ss:$0 sm:$0xff]  ;;  %s348_s0 = smov [#allocation2]   ;;  %s240_s14 = sshll.u32 %s349_s13, 4  ;;  %s241_s14 = int_to_ptr.vmem [resolvable:$true] %s240_s14 }
   0x7   :  { %165 = vperm.xlu1 %268, %v162_v4   ;;  %v24_v7 = vand.u32 2147483647, %v22_v6  ;;  %v23_v51 = vmax.f32 %v22_v6, 0.0  ;;  %s230_s1 = sshll.u32 %s348_s0, 4  ;;  %s231_s1 = int_to_ptr.vmem [resolvable:$true] %s230_s1 }
   0x8   :  { %s303_s15 = scalar_lea.vmem %s231_s1, 32  ;;  %p308_p1 = scmp.lt.s32.totalorder %s231_s1, %s231_s1 }
   0x9   :  { %v25_v8 = vsub.f32 0.0, %v24_v7  ;;  %p304_p0 = scmp.ne.s32.totalorder %s231_s1, %s303_s15  ;;  %p309_p2 = scmp.lt.s32.totalorder %s303_s15, %s303_s15 }
   0xb   :  { %v26_v9 = vmul.f32 1.442695, %v25_v8  ;;  %p310_p3 = por %p309_p2, %p308_p1 }
   0xd   :  { %269 = vpow2.f32 %v26_v9  ;;  %p311_p4 = pnand %p310_p3, %p304_p0 }
  0x1a   :  { %v270_v24 = vpop.eup %269 }
  0x1b   :  { %v28_v27 = vadd.f32 1.0, %v270_v24  ;;  %v31_v36 = vmul.f32 -0.5, %v270_v24  ;;  %v34_v42 = vand.u32 2147483647, %v270_v24 }
  0x1d   :  { %v32_v40 = vadd.f32 1.0, %v31_v36  ;;  %vm35_vm0 = vcmp.lt.f32.partialorder %v34_v42, 0.0004427343 }
  0x1f   :  { %v33_v48 = vmul.f32 %v270_v24, %v32_v40 }
  0x7d   :  { %v45_v10 = vpop.permute.xlu0 %44 }
  0x7e   :  { %v104_v14 = vpop.permute.xlu1 %103  ;;  %v51_v15 = vadd.f32 %v252_v11, %v45_v10 }
  0x7f   :  { %v106_v25 = vadd.f32 %v104_v14, %v39_v20 }
  0x81   :  { %v57_v13 = vpop.permute.xlu0 %56  ;;  %v107_v28 = vrot.slane %v106_v25, 4 }
  0x82   :  { %v63_v16 = vadd.f32 %v253_v12, %v57_v13  ;;  %v166_v21 = vpop.permute.xlu1 %165 }
  0x83   :  { %v168_v26 = vadd.f32 %v166_v21, %v39_v20  ;;  %v108_v30 = vmax.f32 %v106_v25, %v107_v28 }
  0x84   :  { %v64_v17 = vmax.f32 %v51_v15, %v63_v16 }
  0x85   :  { %v169_v29 = vrot.slane %v168_v26, 4  ;;  %v109_v32 = vrot.slane %v108_v30, 2 }
  0x86   :  { %v65_v18 = vsub.f32 %v51_v15, %v64_v17  ;;  %v68_v19 = vsub.f32 %v63_v16, %v64_v17 }
  0x87   :  { %v170_v31 = vmax.f32 %v168_v26, %v169_v29  ;;  %v110_v38 = vmax.f32 %v108_v30, %v109_v32 }
  0x88   :  { %v66_v22 = vmul.f32 1.442695, %v65_v18  ;;  %v69_v23 = vmul.f32 1.442695, %v68_v19 }
  0x89   :  { %v171_v33 = vrot.slane %v170_v31, 2  ;;  %v111_v43 = vrot.slane %v110_v38, 1 }
  0x8a   :  { %271 = vpow2.f32 %v66_v22 }
  0x8b   :  { %273 = vpow2.f32 %v69_v23  ;;  %v172_v39 = vmax.f32 %v170_v31, %v171_v33  ;;  %v112_v49 = vmax.f32 %v110_v38, %v111_v43 }
  0x8c   :  { %275 = vlog2.f32 %v28_v27 }
  0x8d   :  { %v173_v44 = vrot.slane %v172_v39, 1  ;;  %v113_v55 = vsub.f32 %v106_v25, %v112_v49 }
  0x8f   :  { %v174_v50 = vmax.f32 %v172_v39, %v173_v44  ;;  %v114_v61 = vmul.f32 1.442695, %v113_v55 }
  0x91   :  { %v175_v56 = vsub.f32 %v168_v26, %v174_v50 }
  0x93   :  { %v176_v62 = vmul.f32 1.442695, %v175_v56 }
  0x97   :  { %v272_v34 = vpop.eup %271 }
  0x98   :  { %v274_v35 = vpop.eup %273  ;;  %v76_v52 = vmul.f32 %v272_v34, %v254_v45 }
  0x99   :  { %v77_v37 = vadd.f32 %v274_v35, %v272_v34  ;;  %v276_v41 = vpop.eup %275  ;;  %v83_v53 = vmul.f32 %v274_v35, %v255_v46 }
  0x9a   :  { %v30_v47 = vmul.f32 0.6931472, %v276_v41 }
  0x9b   :  { %277 = vrcp.f32 %v77_v37  ;;  %v84_v58 = vadd.f32 %v83_v53, %v76_v52 }
  0x9c   :  { %v36_v54 = vsel %vm35_vm0, %v33_v48, %v30_v47  ;;  %279 = vpow2.f32 %v114_v61 }
  0x9d   :  { %v37_v57 = vadd.f32 %v36_v54, %v23_v51  ;;  %281 = vpow2.f32 %v176_v62 }
  0xa8   :  { %v278_v59 = vpop.eup %277 }
  0xa9   :  { %v86_v60 = vmul.f32 %v278_v59, %v84_v58  ;;  %v280_v5 = vpop.eup %279 }
  0xaa   :  { %v282_v6 = vpop.eup %281  ;;  %v116_v7 = vrot.slane %v280_v5, 4 }
  0xab   :  { %v87_v0 = vmul.f32 %v86_v60, %v37_v57  ;;  %v178_v8 = vrot.slane %v282_v6, 4 }
  0xac   :  { %v117_v9 = vadd.f32 %v280_v5, %v116_v7 }
  0xad   :  { %v88_v1 = vadd.f32 %v87_v0, %v38_v63  ;;  %v179_v11 = vadd.f32 %v282_v6, %v178_v8 }
  0xae   :  { %v118_v13 = vrot.slane %v117_v9, 2 }
  0xaf   :  { %v89_v2 = vand.u32 2147483647, %v88_v1  ;;  %v180_v14 = vrot.slane %v179_v11, 2  ;;  %vm95_vm1 = vcmp.ge.f32.partialorder %v88_v1, 0.0 }
  0xb0   :  { %v119_v15 = vadd.f32 %v118_v13, %v117_v9 }
  0xb1   :  { %v90_v3 = vsub.f32 0.0, %v89_v2  ;;  %v181_v16 = vadd.f32 %v180_v14, %v179_v11 }
  0xb2   :  { %v120_v17 = vrot.slane %v119_v15, 1 }
  0xb3   :  { %v91_v4 = vmul.f32 1.442695, %v90_v3  ;;  %v182_v18 = vrot.slane %v181_v16, 1 }
  0xb4   :  { %v121_v19 = vadd.f32 %v120_v17, %v119_v15 }
  0xb5   :  { %283 = vpow2.f32 %v91_v4  ;;  %v183_v21 = vadd.f32 %v182_v18, %v181_v16 }
  0xc2   :  { %v284_v10 = vpop.eup %283 }
  0xc3   :  { %v93_v12 = vadd.f32 1.0, %v284_v10 }
  0xc5   :  { %285 = vrcp.f32 %v93_v12 }
  0xc6   :  { %287 = vrcp.f32 %v121_v19 }
  0xc7   :  { %289 = vrcp.f32 %v183_v21 }
  0xd2   :  { %v286_v20 = vpop.eup %285 }
  0xd3   :  { %v96_v22 = vmul.f32 %v286_v20, %v284_v10  ;;  %v288_v48 = vpop.eup %287 }
  0xd4   :  { %v290_v51 = vpop.eup %289 }
  0xd5   :  { %v97_v23 = vsel %vm95_vm1, %v286_v20, %v96_v22  ;;  %v98_v24 = vmul.f32 %v286_v20, %v96_v22 }
  0xd6   :  { %v123_v25 = vmul.f32 %v280_v5, %v97_v23  ;;  %v185_v26 = vmul.f32 %v282_v6, %v97_v23 }
  0xd7   :  { %v99_v27 = vmul.f32 %v98_v24, %v37_v57 }
  0xd8   :  { %v124_v28 = vrot.slane %v123_v25, 4  ;;  %v186_v29 = vrot.slane %v185_v26, 4 }
  0xd9   :  { %v144_v30 = vmul.f32 %v280_v5, %v99_v27  ;;  %v206_v31 = vmul.f32 %v282_v6, %v99_v27 }
  0xda   :  { %v125_v32 = vadd.f32 %v124_v28, %v123_v25  ;;  %v187_v33 = vadd.f32 %v186_v29, %v185_v26 }
  0xdb   :  { %v145_v34 = vrot.slane %v144_v30, 4  ;;  %v207_v35 = vrot.slane %v206_v31, 4 }
  0xdc   :  { %v126_v36 = vrot.slane %v125_v32, 2  ;;  %v188_v37 = vrot.slane %v187_v33, 2 }
  0xdd   :  { %v146_v38 = vadd.f32 %v145_v34, %v144_v30  ;;  %v208_v39 = vadd.f32 %v207_v35, %v206_v31 }
  0xde   :  { %v127_v40 = vadd.f32 %v126_v36, %v125_v32  ;;  %v189_v41 = vadd.f32 %v188_v37, %v187_v33 }
  0xdf   :  { %v147_v42 = vrot.slane %v146_v38, 2  ;;  %v209_v43 = vrot.slane %v208_v39, 2 }
  0xe0   :  { %v128_v44 = vrot.slane %v127_v40, 1  ;;  %v190_v45 = vrot.slane %v189_v41, 1 }
  0xe1   :  { %v148_v46 = vadd.f32 %v147_v42, %v146_v38  ;;  %v210_v47 = vadd.f32 %v209_v43, %v208_v39 }
  0xe2   :  { %v129_v49 = vadd.f32 %v128_v44, %v127_v40  ;;  %v191_v50 = vadd.f32 %v190_v45, %v189_v41 }
  0xe3   :  { %v149_v52 = vrot.slane %v148_v46, 1  ;;  %v211_v53 = vrot.slane %v210_v47, 1 }
  0xe4   :  { %v130_v54 = vmul.f32 %v288_v48, %v129_v49  ;;  %v192_v55 = vmul.f32 %v290_v51, %v191_v50 }
  0xe5   :  { %v150_v56 = vadd.f32 %v149_v52, %v148_v46  ;;  %v212_v57 = vadd.f32 %v211_v53, %v210_v47 }
  0xe6   :  { %v131_v58 = vmul.f32 0.999999, %v130_v54  ;;  %v193_v59 = vmul.f32 0.999999, %v192_v55 }
  0xe7   :  { %v151_v60 = vmul.f32 %v288_v48, %v150_v56  ;;  %v213_v61 = vmul.f32 %v290_v51, %v212_v57 }
  0xe8   :  { %v132_v62 = vadd.f32 5e-07, %v131_v58  ;;  %v194_v63 = vadd.f32 5e-07, %v193_v59 }
  0xe9   :  { %v152_v0 = vmax.f32 %v151_v60, 1e-37  ;;  %v214_v1 = vmax.f32 %v213_v61, 1e-37 }
  0xea   :  { %v133_v2 = vmul.f32 100.0, %v132_v62  ;;  %v137_v3 = vsub.f32 1.0, %v132_v62  ;;  %v195_v4 = vmul.f32 100.0, %v194_v63  ;;  %v199_v5 = vsub.f32 1.0, %v194_v63 }
  0xeb   :  { %v153_v8 = vmul.f32 100.0, %v152_v0  ;;  %v215_v9 = vmul.f32 100.0, %v214_v1 }
  0xec   :  { %291 = vlog2.f32 %v133_v2  ;;  %v138_v6 = vmul.f32 100.0, %v137_v3  ;;  %v200_v7 = vmul.f32 100.0, %v199_v5 }
  0xed   :  { %293 = vlog2.f32 %v195_v4 }
  0xee   :  { %295 = vlog2.f32 %v138_v6 }
  0xef   :  { %297 = vlog2.f32 %v200_v7 }
  0xf0   :  { %299 = vlog2.f32 %v153_v8 }
  0xf1   :  { %301 = vlog2.f32 %v215_v9 }
  0xf9   :  { %v292_v10 = vpop.eup %291 }
  0xfa   :  { %v294_v11 = vpop.eup %293  ;;  %v135_v12 = vmul.f32 0.6931472, %v292_v10 }
  0xfb   :  { %v296_v13 = vpop.eup %295  ;;  %v197_v14 = vmul.f32 0.6931472, %v294_v11 }
  0xfc   :  { %v298_v15 = vpop.eup %297  ;;  %v140_v16 = vmul.f32 0.6931472, %v296_v13  ;;  %v256_v20 = vadd.f32 -4.6051702, %v135_v12 }
  0xfd   :  { %v300_v17 = vpop.eup %299  ;;  %v202_v18 = vmul.f32 0.6931472, %v298_v15  ;;  %v260_v23 = vadd.f32 -4.6051702, %v197_v14 }
  0xfe   :  { %v302_v19 = vpop.eup %301  ;;  %v257_v21 = vadd.f32 -4.6051702, %v140_v16  ;;  %v155_v22 = vmul.f32 0.6931472, %v300_v17 }
  0xff   :  { %v261_v24 = vadd.f32 -4.6051702, %v202_v18  ;;  %v217_v25 = vmul.f32 0.6931472, %v302_v19 }
 0x100   :  { %v142_v26 = vsub.f32 %v256_v20, %v257_v21  ;;  %v258_v27 = vadd.f32 -4.6051702, %v155_v22  ;;  %v159_v31 = vadd.f32 %v257_v21, %v256_v20 }
 0x101   :  { %v204_v28 = vsub.f32 %v260_v23, %v261_v24  ;;  %v262_v29 = vadd.f32 -4.6051702, %v217_v25  ;;  %v221_v33 = vadd.f32 %v261_v24, %v260_v23 }
 0x102   :  { %143 = vst [vmem:[#allocation2] sm:$0x1] %v142_v26  ;;  %v259_v30 = vadd.f32 -2e-06, %v258_v27 }
 0x103   :  { %205 = vst [vmem:[#allocation2 + $0x1] sm:$0x1] %v204_v28  ;;  %v263_v32 = vadd.f32 -2e-06, %v262_v29 }
 0x104   :  { %314 = shalt.err (!%p311_p4)
}
 0x105   :  { %233 = dma.vmem_to_hbm [thread:$0]  %s231_s1, 32, %s423_s4, [#allocation3]   ;;  %v158_v34 = vadd.f32 -1.0000005e-06, %v259_v30  ;;  %v220_v35 = vadd.f32 -1.0000005e-06, %v263_v32 }
 0x106   :  { %s323_s18 = scalar_lea.vmem %s241_s14, 32  ;;  %p328_p6 = scmp.lt.s32.totalorder %s241_s14, %s241_s14 }
 0x107   :  { %v160_v36 = vsub.f32 %v158_v34, %v159_v31  ;;  %v222_v37 = vsub.f32 %v220_v35, %v221_v33  ;;  %p324_p5 = scmp.ne.s32.totalorder %s241_s14, %s323_s18  ;;  %p329_p7 = scmp.lt.s32.totalorder %s323_s18, %s323_s18 }
 0x109   :  { %161 = vst [vmem:[#allocation4] sm:$0x1] %v160_v36  ;;  %223 = vst [vmem:[#allocation4 + $0x1] sm:$0x1] %v222_v37  ;;  %p330_p8 = por %p329_p7, %p328_p6 }
 0x10b   :  { %p331_p9 = pnand %p330_p8, %p324_p5 }
 0x10d   :  { %334 = shalt.err (!%p331_p9)
}
 0x10e   :  { %243 = dma.vmem_to_hbm [thread:$0]  %s241_s14, 32, %s424_s5, [#allocation5]  }
 0x10f   :  { %343 = dma.done.wait [#allocation3], 32  }
 0x110   :  { %344 = vsyncadd [#allocation3], 4294967264 }
 0x111   :  { %345 = dma.done.wait [#allocation5], 32  }
 0x112   :  { %346 = vsyncadd [#allocation5], 4294967264 }
 0x113   :  { %250 = vsyncpa [#allocation3], 1 }
 0x114   :  { %251 = vsyncpa [#allocation5], 1 }

</bundles_post_ra>
